<compile_context>
chip_gen: v7x
topology: tpu7x:2x2x1
jax: 0.10.0
libtpu: 0.0.40
codegen_flags: <defaults>
</compile_context>

<pallas_src>
import functools

import jax
import jax.numpy as jnp
from jax.experimental import pallas as pl
from jax.experimental.pallas import tpu as pltpu


def _mha_kernel(x_ref, bias_ref, wqkv_ref, wp_ref, bp_ref, o_ref, *,
                num_heads, head_size):
    """One grid step == one batch element.

    x_ref    : (T, C)        VMEM f32   rows of batch b
    bias_ref : (T, T)        VMEM f32   additive causal mask (0 / -1e30)
    wqkv_ref : (C, 3*H*hs)   VMEM bf16  [q_h0..q_hH-1 | k_... | v_...], scale folded in Q
    wp_ref   : (H*hs, C_out) VMEM bf16  proj weight (already transposed)
    bp_ref   : (1, C_out)    VMEM f32   proj bias
    o_ref    : (T, C_out)    VMEM
    """
    H, hs = num_heads, head_size

    x = x_ref[...]                                    # (T, C) f32
    T = x.shape[0]

    # Fused QKV projection on the MXU: bf16 operands, f32 accumulation.
    qkv = jnp.dot(x.astype(jnp.bfloat16), wqkv_ref[...],
                  preferred_element_type=jnp.float32)          # (T, 3*H*hs)

    # Single relayout to head-major (3*H, T, hs) instead of per-head lane slices.
    qkv = jnp.transpose(qkv.reshape(T, 3 * H, hs), (1, 0, 2))
    q = qkv[0:H]                                      # (H, T, hs)  (scale pre-folded)
    k = qkv[H:2 * H]                                  # (H, T, hs)
    v = qkv[2 * H:3 * H]                              # (H, T, hs)

    # Batched scores over heads: (H, T, T); causal mask as an additive bias.
    s = jax.lax.dot_general(q.astype(jnp.bfloat16), k.astype(jnp.bfloat16),
                            (((2,), (2,)), ((0,), (0,))),
                            preferred_element_type=jnp.float32)
    s = s + bias_ref[...][None, :, :]

    # Stacked softmax (single pass over all heads), f32 elementwise.
    m = jnp.max(s, axis=-1, keepdims=True)
    p = jnp.exp(s - m)
    denom = jnp.sum(p, axis=-1, keepdims=True)
    p = p * pl.reciprocal(denom, approx=True)         # EUP slot, off the VALU

    # Batched PV: (H, T, hs), then lane-concatenate heads -> (T, H*hs).
    head_out = jax.lax.dot_general(p.astype(jnp.bfloat16), v.astype(jnp.bfloat16),
                                   (((2,), (1,)), ((0,), (0,))),
                                   preferred_element_type=jnp.float32)
    cat = jnp.transpose(head_out, (1, 0, 2)).reshape(T, H * hs)

    # Single K=H*hs output projection + bias.
    out = jnp.dot(cat.astype(jnp.bfloat16), wp_ref[...],
                  preferred_element_type=jnp.float32) + bp_ref[...]
    o_ref[...] = out.astype(o_ref.dtype)


def multi_head_attention(x, wq, wk, wv, w_proj, b_proj):
    """x: (B,T,C); wq/wk/wv: (H,C,hs); w_proj: (C_out, H*hs) torch layout; b_proj: (C_out,).

    Call under jax.jit with weights as constants/arguments so the repacking
    below (transpose / concat / casts) is folded once, not per forward.
    """
    B, T, C = x.shape
    H, _, hs = wq.shape
    Hh = H * hs
    assert Hh == w_proj.shape[1]
    C_out = w_proj.shape[0]
    BT = B * T

    def stack_heads(w):                       # (H, C, hs) -> (C, H*hs)
        return jnp.transpose(w, (1, 0, 2)).reshape(C, Hh)

    # Fused QKV weight, bf16 for native MXU throughput; softmax 1/sqrt(hs)
    # folded into the Q columns (compile-time constant fold under jit).
    scale = jnp.float32(hs) ** -0.5
    w_qkv = jnp.concatenate(
        [stack_heads(wq) * scale, stack_heads(wk), stack_heads(wv)],
        axis=1).astype(jnp.bfloat16)                           # (C, 3*Hh)
    wp_t = jnp.transpose(w_proj).astype(jnp.bfloat16)          # (Hh, C_out)
    bp = b_proj.reshape(1, C_out).astype(jnp.float32)

    # Additive causal-mask bias: 0 on/below diagonal, -1e30 above (NaN-safe).
    tril = jnp.tril(jnp.ones((T, T), dtype=bool))
    mask_bias = jnp.where(tril, 0.0, -1e30).astype(jnp.float32)

    kernel = functools.partial(_mha_kernel, num_heads=H, head_size=hs)

    out_flat = pl.pallas_call(
        kernel,
        out_shape=jax.ShapeDtypeStruct((BT, C_out), x.dtype),
        grid_spec=pltpu.PrefetchScalarGridSpec(
            num_scalar_prefetch=0,
            # One grid step per batch element; "parallel" lets v7x shard the
            # two steps across its two TensorCores (no-op on v5e/v6e).
            grid=(B,),
            in_specs=[
                pl.BlockSpec((T, C), lambda b: (b, 0)),          # x rows of batch b
                pl.BlockSpec((T, T), lambda b: (0, 0)),          # causal bias (resident)
                pl.BlockSpec((C, 3 * Hh), lambda b: (0, 0)),     # fused Wqkv (resident)
                pl.BlockSpec((Hh, C_out), lambda b: (0, 0)),     # proj W^T (resident)
                pl.BlockSpec((1, C_out), lambda b: (0, 0)),      # proj bias (resident)
            ],
            # NOTE: at C_out=32 stores are masked (25% lane occupancy); pad /
            # keep C_out a multiple of 128 when this is reused at real sizes.
            out_specs=pl.BlockSpec((T, C_out), lambda b: (b, 0)),
        ),
        compiler_params=pltpu.CompilerParams(
            dimension_semantics=("parallel",)),
    )(x.reshape(BT, C), mask_bias, w_qkv, wp_t, bp)

    return out_flat.reshape(B, T, C_out)


def _reference(x, wq, wk, wv, w_proj, b_proj):
    """Pure-JAX f32 reference mirroring the PyTorch module (eval mode)."""
    H, C, hs = wq.shape
    outs = []
    T = x.shape[1]
    tril = jnp.tril(jnp.ones((T, T), dtype=bool))
    for h in range(H):
        q = x @ wq[h]
        k = x @ wk[h]
        v = x @ wv[h]
        wei = (q @ jnp.swapaxes(k, -2, -1)) * (hs ** -0.5)
        wei = jnp.where(tril, wei, -jnp.inf)
        wei = jax.nn.softmax(wei, axis=-1)
        outs.append(wei @ v)
    cat = jnp.concatenate(outs, axis=-1)
    return cat @ w_proj.T + b_proj


if __name__ == "__main__":
    # Small shapes consistent with the module.
    B, T = 2, 8                 # batch, sequence (== block_size)
    n_embd = 32
    num_heads = 4
    head_size = 8               # head_size * num_heads == n_embd

    key = jax.random.PRNGKey(0)
    kx, kq, kk, kv, kpw, kpb = jax.random.split(key, 6)

    x = jax.random.normal(kx, (B, T, n_embd), dtype=jnp.float32)

    # Per-head Linear(n_embd, head_size, bias=False) weights, stored as
    # (H, n_embd, head_size) == torch weight (head_size, n_embd) transposed.
    init = 0.1
    wq = jax.random.uniform(kq, (num_heads, n_embd, head_size), jnp.float32, -init, init)
    wk = jax.random.uniform(kk, (num_heads, n_embd, head_size), jnp.float32, -init, init)
    wv = jax.random.uniform(kv, (num_heads, n_embd, head_size), jnp.float32, -init, init)

    # proj: Linear(head_size*num_heads, n_embd) — torch layout (out, in) + bias
    w_proj = jax.random.uniform(kpw, (n_embd, num_heads * head_size), jnp.float32, -init, init)
    b_proj = jax.random.uniform(kpb, (n_embd,), jnp.float32, -init, init)

    # jit so the wrapper-side weight repacking / casts are folded once.
    mha = jax.jit(multi_head_attention)
    out = mha(x, wq, wk, wv, w_proj, b_proj)
    out = jax.block_until_ready(out)

    ref = _reference(x, wq, wk, wv, w_proj, b_proj)
    assert out.shape == (B, T, n_embd)
    # Tolerance covers bf16 MXU operands and pl.reciprocal(approx=True) in the
    # softmax normalization.
    assert jnp.allclose(out, ref, atol=2e-2, rtol=2e-2), (
        "mismatch vs reference; max abs diff = "
        f"{float(jnp.max(jnp.abs(out - ref)))}")

    print("KERNEL_OK")
</pallas_src>

<mosaic_0001>
module attributes {stable_mosaic.version = 11 : i64} {
  func.func @_mha_kernel(%arg0: i32, %arg1: memref<8x32xf32, #tpu.memory_space<vmem>>, %arg2: memref<8x8xf32, #tpu.memory_space<vmem>>, %arg3: memref<32x96xbf16, #tpu.memory_space<vmem>>, %arg4: memref<32x32xbf16, #tpu.memory_space<vmem>>, %arg5: memref<1x32xf32, #tpu.memory_space<vmem>>, %arg6: memref<8x32xf32, #tpu.memory_space<vmem>>) attributes {dimension_semantics = [#tpu.dimension_semantics<parallel>], iteration_bounds = array<i64: 2>, scalar_prefetch = 0 : i64, scratch_operands = 0 : i64, tpu.core_type = #tpu.core_type<tc>, window_params = [{transform_indices = @transform_0, window_bounds = array<i64: 8, 32>}, {pipeline_mode = #tpu.pipeline_mode<synchronous>, transform_indices = @transform_1, window_bounds = array<i64: 8, 8>}, {pipeline_mode = #tpu.pipeline_mode<synchronous>, transform_indices = @transform_2, window_bounds = array<i64: 32, 96>}, {pipeline_mode = #tpu.pipeline_mode<synchronous>, transform_indices = @transform_3, window_bounds = array<i64: 32, 32>}, {pipeline_mode = #tpu.pipeline_mode<synchronous>, transform_indices = @transform_4, window_bounds = array<i64: 1, 32>}, {transform_indices = @transform_5, window_bounds = array<i64: 8, 32>}]} {
    %c0 = arith.constant 0 : index
    %c0_0 = arith.constant 0 : index
    %0 = vector.load %arg1[%c0, %c0_0] : memref<8x32xf32, #tpu.memory_space<vmem>>, vector<8x32xf32>
    %1 = arith.truncf %0 : vector<8x32xf32> to vector<8x32xbf16>
    %c0_1 = arith.constant 0 : index
    %c0_2 = arith.constant 0 : index
    %2 = vector.load %arg3[%c0_1, %c0_2] : memref<32x96xbf16, #tpu.memory_space<vmem>>, vector<32x96xbf16>
    %cst = arith.constant dense<0.000000e+00> : vector<8x96xf32>
    %3 = tpu.matmul %1, %2, %cst {dimension_numbers = #tpu.dot_dimension_numbers<[1], [0], [0], [1], [0, 0, 1, 1], [], []>} : vector<8x32xbf16>, vector<32x96xbf16>, vector<8x96xf32> -> vector<8x96xf32>
    %4 = vector.shape_cast %3 : vector<8x96xf32> to vector<8x12x8xf32>
    %5 = tpu.transpose %4, [1, 0, 2] : vector<8x12x8xf32> -> vector<12x8x8xf32>
    %6 = vector.extract_strided_slice %5 {offsets = [0, 0, 0], sizes = [4, 8, 8], strides = [1, 1, 1]} : vector<12x8x8xf32> to vector<4x8x8xf32>
    %7 = vector.extract_strided_slice %5 {offsets = [4, 0, 0], sizes = [4, 8, 8], strides = [1, 1, 1]} : vector<12x8x8xf32> to vector<4x8x8xf32>
    %8 = vector.extract_strided_slice %5 {offsets = [8, 0, 0], sizes = [4, 8, 8], strides = [1, 1, 1]} : vector<12x8x8xf32> to vector<4x8x8xf32>
    %9 = arith.truncf %6 : vector<4x8x8xf32> to vector<4x8x8xbf16>
    %10 = arith.truncf %7 : vector<4x8x8xf32> to vector<4x8x8xbf16>
    %cst_3 = arith.constant dense<0.000000e+00> : vector<4x8x8xf32>
    %11 = tpu.matmul %9, %10, %cst_3 {dimension_numbers = #tpu.dot_dimension_numbers<[2], [2], [1], [1], [0, 0, 0, 1, 1, 1], [0], [0]>} : vector<4x8x8xbf16>, vector<4x8x8xbf16>, vector<4x8x8xf32> -> vector<4x8x8xf32>
    %c0_4 = arith.constant 0 : index
    %c0_5 = arith.constant 0 : index
    %12 = vector.load %arg2[%c0_4, %c0_5] : memref<8x8xf32, #tpu.memory_space<vmem>>, vector<8x8xf32>
    %13 = vector.shape_cast %12 : vector<8x8xf32> to vector<1x8x8xf32>
    %14 = vector.broadcast %13 : vector<1x8x8xf32> to vector<4x8x8xf32>
    %15 = arith.addf %11, %14 : vector<4x8x8xf32>
    %cst_6 = arith.constant dense<0xFF800000> : vector<4x8xf32>
    %16 = vector.multi_reduction <maximumf>, %15, %cst_6 [2] : vector<4x8x8xf32> to vector<4x8xf32>
    %17 = vector.shape_cast %16 : vector<4x8xf32> to vector<4x8x1xf32>
    %18 = vector.broadcast %17 : vector<4x8x1xf32> to vector<4x8x8xf32>
    %19 = arith.subf %15, %18 : vector<4x8x8xf32>
    %20 = math.exp %19 : vector<4x8x8xf32>
    %cst_7 = arith.constant dense<0.000000e+00> : vector<4x8xf32>
    %21 = vector.multi_reduction <add>, %20, %cst_7 [2] : vector<4x8x8xf32> to vector<4x8xf32>
    %22 = vector.shape_cast %21 : vector<4x8xf32> to vector<4x8x1xf32>
    %23 = tpu.reciprocal %22 {approx = true} : vector<4x8x1xf32> -> vector<4x8x1xf32>
    %24 = vector.broadcast %23 : vector<4x8x1xf32> to vector<4x8x8xf32>
    %25 = arith.mulf %20, %24 : vector<4x8x8xf32>
    %26 = arith.truncf %25 : vector<4x8x8xf32> to vector<4x8x8xbf16>
    %27 = arith.truncf %8 : vector<4x8x8xf32> to vector<4x8x8xbf16>
    %cst_8 = arith.constant dense<0.000000e+00> : vector<4x8x8xf32>
    %28 = tpu.matmul %26, %27, %cst_8 {dimension_numbers = #tpu.dot_dimension_numbers<[2], [1], [1], [2], [0, 0, 0, 1, 1, 2], [0], [0]>} : vector<4x8x8xbf16>, vector<4x8x8xbf16>, vector<4x8x8xf32> -> vector<4x8x8xf32>
    %29 = tpu.transpose %28, [1, 0, 2] : vector<4x8x8xf32> -> vector<8x4x8xf32>
    %30 = vector.shape_cast %29 : vector<8x4x8xf32> to vector<8x32xf32>
    %31 = arith.truncf %30 : vector<8x32xf32> to vector<8x32xbf16>
    %c0_9 = arith.constant 0 : index
    %c0_10 = arith.constant 0 : index
    %32 = vector.load %arg4[%c0_9, %c0_10] : memref<32x32xbf16, #tpu.memory_space<vmem>>, vector<32x32xbf16>
    %cst_11 = arith.constant dense<0.000000e+00> : vector<8x32xf32>
    %33 = tpu.matmul %31, %32, %cst_11 {dimension_numbers = #tpu.dot_dimension_numbers<[1], [0], [0], [1], [0, 0, 1, 1], [], []>} : vector<8x32xbf16>, vector<32x32xbf16>, vector<8x32xf32> -> vector<8x32xf32>
    %c0_12 = arith.constant 0 : index
    %c0_13 = arith.constant 0 : index
    %34 = vector.load %arg5[%c0_12, %c0_13] : memref<1x32xf32, #tpu.memory_space<vmem>>, vector<1x32xf32>
    %35 = vector.broadcast %34 : vector<1x32xf32> to vector<8x32xf32>
    %36 = arith.addf %33, %35 : vector<8x32xf32>
    %c0_14 = arith.constant 0 : index
    %c0_15 = arith.constant 0 : index
    %37 = vector.load %arg6[%c0_14, %c0_15] : memref<8x32xf32, #tpu.memory_space<vmem>>, vector<8x32xf32>
    tpu.vector_store %arg6[%c0_14, %c0_15], %36 {strides = array<i32>} : memref<8x32xf32, #tpu.memory_space<vmem>>, vector<8x32xf32>,
    return
  }
  func.func @transform_0(%arg0: i32) -> (i32, i32) {
    %c0_i32 = arith.constant 0 : i32
    %c0_i32_0 = arith.constant 0 : i32
    return %arg0, %c0_i32 : i32, i32
  }
  func.func @transform_1(%arg0: i32) -> (i32, i32) {
    %c0_i32 = arith.constant 0 : i32
    %c0_i32_0 = arith.constant 0 : i32
    %c0_i32_1 = arith.constant 0 : i32
    return %c0_i32, %c0_i32_0 : i32, i32
  }
  func.func @transform_2(%arg0: i32) -> (i32, i32) {
    %c0_i32 = arith.constant 0 : i32
    %c0_i32_0 = arith.constant 0 : i32
    %c0_i32_1 = arith.constant 0 : i32
    return %c0_i32, %c0_i32_0 : i32, i32
  }
  func.func @transform_3(%arg0: i32) -> (i32, i32) {
    %c0_i32 = arith.constant 0 : i32
    %c0_i32_0 = arith.constant 0 : i32
    %c0_i32_1 = arith.constant 0 : i32
    return %c0_i32, %c0_i32_0 : i32, i32
  }
  func.func @transform_4(%arg0: i32) -> (i32, i32) {
    %c0_i32 = arith.constant 0 : i32
    %c0_i32_0 = arith.constant 0 : i32
    %c0_i32_1 = arith.constant 0 : i32
    return %c0_i32, %c0_i32_0 : i32, i32
  }
  func.func @transform_5(%arg0: i32) -> (i32, i32) {
    %c0_i32 = arith.constant 0 : i32
    %c0_i32_0 = arith.constant 0 : i32
    return %arg0, %c0_i32 : i32, i32
  }
}

</mosaic_0001>

<bundles_post_ra>
// kernel: multi_head_attention.1
= control target key start
LH: loop header
LB: loop body
LE: loop exit
PB: predicated region body
PF: predicated region fallthrough
CT: control target
= control target key end

     0   :  { %10 = vsyncpa [#allocation3], 0  ;;  %s2040_s0 = inlined_call_operand.vmem [shape: f32[16,32], index: 0, kind: input, shape index: {}]   ;;  %s2041_s1 = inlined_call_operand.vmem [shape: f32[8,8], index: 1, kind: input, shape index: {}]   ;;  %s2042_s2 = inlined_call_operand.vmem [shape: bf16[32,96], index: 2, kind: input, shape index: {}]   ;;  %s2043_s3 = inlined_call_operand.vmem [shape: bf16[32,32], index: 3, kind: input, shape index: {}]   ;;  %s2044_s4 = inlined_call_operand.vmem [shape: f32[1,32], index: 4, kind: input, shape index: {}]   ;;  %s2045_s5 = inlined_call_operand.hbm [shape: f32[16,32], index: 5, kind: output, shape index: {}]  }
   0x1   :  { %12 = vsyncpa [#allocation3 + $0x1], 0  ;;  %s1763_s18 = smov 0   ;;  %s1765_s19 = smov 0  }
   0x2   :  { %s1767_s20 = smov 0   ;;  %s1769_s21 = smov 0  }
   0x3 LB: > { %s1784_s22 = sadd.s32 4294967295, %s1712_s21   ;;  %s1450_s23 = sadd.s32 4294967294, %s1712_s21   ;;  %s1712_s21 = sphi %s1769_s21, %s2051_s21   ;;  %s1708_s20 = sphi %s1767_s20, %s2050_s20   ;;  %s1704_s19 = sphi %s1765_s19, %s2049_s19   ;;  %s1700_s18 = sphi %s1763_s18, %s2048_s18  }
   0x4   : > { %s1788_s24 = sadd.s32 1, %s1712_s21   ;;  %s135_s25 = sadd.s32 1, %s1708_s20 }
   0x5   : > { %s132_s26 = ssub.s32 %s1712_s21, %s1788_s24  ;;  %p145_p0 = scmp.ne.s32.totalorder %s1708_s20, %s1704_s19 }
   0x6   : > { %p133_p1 = scmp.eq.s32.totalorder %s132_s26, 0  ;;  %p146_p2 = scmp.eq.s32.totalorder %s1784_s22, 1 }
   0x7   : > { %p151_p3 = scmp.ne.s32.totalorder %s1704_s19, %s1700_s18  ;;  %p152_p4 = scmp.eq.s32.totalorder %s1450_s23, 1 }
   0x8   : > { %s1799_s27 = scalar_select %p133_p1, %s1708_s20, %s135_s25  }
   0x9   : > { %p1801_p5 = por %p146_p2, %p145_p0  ;;  %p1805_p6 = por %p152_p4, %p151_p3 }
   0xa   : > { %p1453_p7 = scmp.ge.s32.totalorder %s1712_s21, 1  ;;  %p189_p8 = scmp.lt.s32.totalorder %s1712_s21, 3 }
   0xc   : > { %p190_p9 = pnand %p1453_p7, %p189_p8 }
   0xd   : > { %v1630_v0 = vld [vmem:[%s2042_s2] sm:$0xff] (!%p190_p9)   ;;  %v1714_v1 = vmov (!%p190_p9), 0.0   ;;  %v1631_v2 = vld [vmem:[%s2042_s2 + $0x8] sm:$0xff] (!%p190_p9)   ;;  %vm1715_vm0 = vmmov (!%p190_p9), 0   ;;  %p216_p10 = scmp.lt.s32.totalorder (!%p190_p9), %s1784_s22, 1  ;;  %vm239_vm1 = vcmask (!%p190_p9), 261120   ;;  %v322_v11 = vlaneseq (!%p190_p9) }
   0xe   : > { %193 = sbr.rel (%p190_p9) target bundleno = 1552 (0x610), region = 40  ;;  %1509 = vmatprep.subr.bf16.mxu0 (!%p190_p9), %v1714_v1  ;;  %1517 = vmatprep.subr.bf16.mxu1 (!%p190_p9), %v1714_v1  ;;  %s1716_s14 = smov (!%p190_p9), 80   ;;  %v1723_v9 = vmov (!%p190_p9), 1983009808   ;;  %v1724_v12 = vmov (!%p190_p9), 1934713408  }
   0xf   : > { %1510 = vmatpush3.bf16.msra.mxu0 (!%p190_p9), %v1630_v0  ;;  %1513 = vmatprep.mubr.msk.bf16.mxu0 (!%p190_p9), %vm1715_vm0, %v1714_v1  ;;  %s1717_s15 = smov (!%p190_p9), 96   ;;  %s1718_s16 = smov (!%p190_p9), 72   ;;  %v320_v10 = vunpack.c.l.s4 (!%p190_p9), %v1723_v9  ;;  %v384_v13 = vunpack.c.l.s4 (!%p190_p9), %v1724_v12  ;;  %v323_v15 = vshrl.u32 (!%p190_p9), %v322_v11, 7  ;;  %vm734_vm2 = vcmask (!%p190_p9), 64512  }
  0x10   : > { %1511 = vmatprep.subr.bf16.mxu0 (!%p190_p9), %v1714_v1  ;;  %1519 = vmatprep.mubr.msk.bf16.mxu1 (!%p190_p9), %vm1715_vm0, %v1714_v1  ;;  %s1719_s17 = smov (!%p190_p9), 88   ;;  %s1720_s23 = smov (!%p190_p9), 112   ;;  %vm974_vm3 = vcmask (!%p190_p9), 1043456   ;;  %vm1305_vm4 = vcmask (!%p190_p9), 130048   ;;  %vm1307_vm5 = vcmask (!%p190_p9), 195584  }
  0x11   : > { %s1721_s25 = smov (!%p190_p9), 120   ;;  %s1722_s26 = smov (!%p190_p9), 104   ;;  %v321_v14 = vunpack.c.0.s8 (!%p190_p9), %v320_v10  ;;  %v385_v18 = vunpack.c.0.s8 (!%p190_p9), %v384_v13 }
  0x12   : > { %s1725_s7 = smov (!%p190_p9), 56   ;;  %s1726_s8 = smov (!%p190_p9), 64  }
  0x13   : > { %1512 = vmatpush3.bf16.msra.mxu0 (!%p190_p9), %v1631_v2  ;;  %v1842_v19 = vsub.s32 (!%p190_p9), %v321_v14, %v323_v15  ;;  %v1844_v26 = vsub.s32 (!%p190_p9), %v385_v18, %v323_v15  ;;  %s1484_s6 = sshll.u32 (!%p190_p9), %s1784_s22, 7 }
  0x14   : > { %1523 = vmatprep.subr.bf16.mxu0 (!%p190_p9), %v1714_v1  ;;  %s1997_s11 = scalar_lea.hbm (!%p190_p9), %s2045_s5, %s1484_s6 }
  0x15   : > { %s217_s9 = scalar_select %p216_p10, %s1784_s22, 1 }
  0x17   : > { %s1455_s10 = sshll.u32 %s217_s9, 3  ;;  %s1727_s9 = smov 48  }
  0x18   : > { %s219_s13 = scalar_lea.vmem %s2040_s0, %s1455_s10  ;;  %s1728_s10 = smov 40  }
  0x19   : > { %v221_v3 = vld [vmem:[%s219_s13] sm:$0xff]  ;;  %s1732_s13 = smov [#allocation2]  }
  0x1a   : > { %v222_v4 = vpack.c.bf16 %v221_v3, %v221_v3 }
  0x1c   : > { %1514 = vmatmul.mubr.msk.bf16.vlgmr.msra.gmra.mrb[0].mxu0 %vm239_vm1, %v222_v4 }
  0x1d   : > { %1525 = vmatprep.mubr.msk.bf16.mxu0 %vm1715_vm0, %v1714_v1 }
  0xef   : > { %v1833_v5 = vpop.f32.mrb[0].mxu0 }
  0xf0   : > { %299 = vrot.lane.b32.xlu1 %v1833_v5, %s1716_s14  ;;  %293 = vrot.lane.b32.xlu0 %v1833_v5, %s1717_s15  ;;  %v1515_v6 = vpop.f32.mrb[1].mxu0  ;;  %s1729_s15 = smov 16   ;;  %s1654_s14 = sshll.u32 %s1732_s13, 4  ;;  %s1655_s14 = int_to_ptr.vmem [resolvable:$false] %s1654_s14 }
  0xf1   : > { %v280_v7 = vpop.f32.mrb[2].mxu0 }
  0xf2   : > { %v1516_v8 = vpop.f32.mrb[3].mxu0 }
  0xf4   : > { %302 = vrot.lane.b32.xlu1 %v1833_v5, %s1718_s16  ;;  %296 = vrot.lane.b32.xlu0 %v1833_v5, %s1719_s17  ;;  %s1730_s16 = smov 8   ;;  %s1731_s17 = smov 24  }
  0xf8   : > { %287 = vrot.lane.b32.xlu1 %v1833_v5, %s1720_s23  ;;  %284 = vrot.lane.b32.xlu0 %v1833_v5, %s1721_s25  ;;  %s213_s23 = sand.u32 1, %s1704_s19  }
  0xf9   : > { %s1454_s25 = sshll.u32 %s213_s23, 3  ;;  %s1378_s22 = scalar_lea.sflag [#allocation3], %s213_s23 }
  0xfc   : > { %290 = vrot.lane.b32.xlu0 %v1833_v5, %s1722_s26 }
 0x162   : > { %v300_v16 = vpop.permute.xlu1 %299  ;;  %v294_v17 = vpop.permute.xlu0 %293 }
 0x163   : > { %v349_v20 = vcombine.low %v294_v17, %v300_v16  ;;  %v350_v21 = vcombine.high %v294_v17, %v300_v16 }
 0x165   : > { %v357_v27 = vrot.slane %v349_v20, %v1842_v19  ;;  %v364_v28 = vrot.slane %v350_v21, %v1842_v19 }
 0x166   : > { %v303_v22 = vpop.permute.xlu1 %302  ;;  %v297_v23 = vpop.permute.xlu0 %296 }
 0x167   : > { %v365_v24 = vcombine.low %v297_v23, %v303_v22  ;;  %v366_v25 = vcombine.high %v297_v23, %v303_v22 }
 0x169   : > { %v373_v29 = vrot.slane %v365_v24, %v1842_v19  ;;  %v380_v30 = vrot.slane %v366_v25, %v1842_v19 }
 0x16a   : > { %v285_v31 = vpop.permute.xlu0 %284  ;;  %v288_v36 = vpop.permute.xlu1 %287 }
 0x16b   : > { %v413_v32 = vcombine.low %v357_v27, %v373_v29  ;;  %v414_v33 = vcombine.high %v357_v27, %v373_v29  ;;  %v429_v34 = vcombine.low %v364_v28, %v380_v30  ;;  %v430_v35 = vcombine.high %v364_v28, %v380_v30 }
 0x16c   : > { %v317_v41 = vcombine.low %v1833_v5, %v288_v36  ;;  %v318_v42 = vcombine.high %v1833_v5, %v288_v36 }
 0x16d   : > { %v421_v37 = vrot.slane %v413_v32, %v1844_v26  ;;  %v428_v38 = vrot.slane %v414_v33, %v1844_v26  ;;  %v437_v39 = vrot.slane %v429_v34, %v1844_v26  ;;  %v444_v40 = vrot.slane %v430_v35, %v1844_v26 }
 0x16e   : > { %v291_v43 = vpop.permute.xlu0 %290  ;;  %v325_v54 = vrot.slane %v317_v41, %v1842_v19  ;;  %v332_v55 = vrot.slane %v318_v42, %v1842_v19 }
 0x16f   : > { %v1460_v44 = vcombine.low %v421_v37, %v428_v38  ;;  %v1462_v45 = vcombine.high %v421_v37, %v428_v38  ;;  %v1464_v46 = vcombine.low %v437_v39, %v444_v40  ;;  %v1466_v47 = vcombine.high %v437_v39, %v444_v40 }
 0x170   : > { %v333_v48 = vcombine.low %v285_v31, %v291_v43  ;;  %v334_v49 = vcombine.high %v285_v31, %v291_v43 }
 0x171   : > { %v536_v50 = vrot.slane %v1460_v44, %v1842_v19  ;;  %v552_v51 = vrot.slane %v1462_v45, %v1842_v19  ;;  %v568_v52 = vrot.slane %v1464_v46, %v1842_v19  ;;  %v584_v53 = vrot.slane %v1466_v47, %v1842_v19 }
 0x172   : > { %v341_v56 = vrot.slane %v333_v48, %v1842_v19  ;;  %v348_v57 = vrot.slane %v334_v49, %v1842_v19 }
 0x173   : > { %v601_v58 = vcombine.low %v536_v50, %v552_v51  ;;  %v633_v59 = vcombine.low %v568_v52, %v584_v53  ;;  %v602_v3 = vcombine.high %v536_v50, %v552_v51  ;;  %v634_v4 = vcombine.high %v568_v52, %v584_v53  ;;  %v733_v50 = vld [vmem:[%s2041_s1] sm:$0xff] }
 0x174   : > { %v381_v60 = vcombine.low %v325_v54, %v341_v56  ;;  %v382_v61 = vcombine.high %v325_v54, %v341_v56  ;;  %v397_v62 = vcombine.low %v332_v55, %v348_v57  ;;  %v398_v63 = vcombine.high %v332_v55, %v348_v57 }
 0x175   : > { %v609_v0 = vrot.slane %v601_v58, %v1844_v26  ;;  %v641_v2 = vrot.slane %v633_v59, %v1844_v26  ;;  %v616_v18 = vrot.slane %v602_v3, %v1844_v26  ;;  %v648_v20 = vrot.slane %v634_v4, %v1844_v26 }
 0x176   : > { %v389_v6 = vrot.slane %v381_v60, %v1844_v26  ;;  %v396_v7 = vrot.slane %v382_v61, %v1844_v26  ;;  %v405_v8 = vrot.slane %v397_v62, %v1844_v26  ;;  %v412_v9 = vrot.slane %v398_v63, %v1844_v26 }
 0x177   : > { %v653_v10 = vcombine.low %v609_v0, %v641_v2  ;;  %v654_v11 = vcombine.high %v609_v0, %v641_v2  ;;  %v655_v30 = vcombine.low %v616_v18, %v648_v20  ;;  %v656_v31 = vcombine.high %v616_v18, %v648_v20 }
 0x178   : > { %v1459_v12 = vcombine.low %v389_v6, %v396_v7  ;;  %v1461_v13 = vcombine.high %v389_v6, %v396_v7  ;;  %v1463_v14 = vcombine.low %v405_v8, %v412_v9  ;;  %v1465_v15 = vcombine.high %v405_v8, %v412_v9 }
 0x179   : > { %v729_v16 = vpack.c.bf16 %v653_v10, %v653_v10  ;;  %v730_v17 = vpack.c.bf16 %v654_v11, %v654_v11  ;;  %v731_v38 = vpack.c.bf16 %v655_v30, %v655_v30  ;;  %v732_v39 = vpack.c.bf16 %v656_v31, %v656_v31 }
 0x17a   : > { %v529_v21 = vrot.slane %v1459_v12, %v1842_v19  ;;  %v545_v22 = vrot.slane %v1461_v13, %v1842_v19  ;;  %v561_v23 = vrot.slane %v1463_v14, %v1842_v19  ;;  %v577_v24 = vrot.slane %v1465_v15, %v1842_v19 }
 0x17b   : > { %v739_v25 = vsel %vm734_vm2, %v729_v16, 0  ;;  %v785_v27 = vsel %vm734_vm2, %v730_v17, 0  ;;  %v831_v44 = vsel %vm734_vm2, %v731_v38, 0  ;;  %v877_v45 = vsel %vm734_vm2, %v732_v39, 0 }
 0x17c   : > { %1518 = vmatpush3.bf16.xpose.msra.mxu1 %v739_v25  ;;  %1524 = vmatpush3.bf16.xpose.msra.mxu0 %v785_v27  ;;  %v585_v28 = vcombine.low %v529_v21, %v545_v22  ;;  %v617_v29 = vcombine.low %v561_v23, %v577_v24  ;;  %v586_v33 = vcombine.high %v529_v21, %v545_v22 }
 0x17d   : > { %1529 = vmatprep.subr.bf16.mxu1 %v1714_v1  ;;  %1535 = vmatprep.subr.bf16.mxu0 %v1714_v1  ;;  %v618_v34 = vcombine.high %v561_v23, %v577_v24 }
 0x17e   : > { %v593_v32 = vrot.slane %v585_v28, %v1844_v26  ;;  %v625_v35 = vrot.slane %v617_v29, %v1844_v26  ;;  %v600_v42 = vrot.slane %v586_v33, %v1844_v26 }
 0x17f   : > { %v632_v43 = vrot.slane %v618_v34, %v1844_v26 }
 0x180   : > { %v649_v36 = vcombine.low %v593_v32, %v625_v35  ;;  %v650_v37 = vcombine.high %v593_v32, %v625_v35 }
 0x181   : > { %v651_v46 = vcombine.low %v600_v42, %v632_v43  ;;  %v652_v47 = vcombine.high %v600_v42, %v632_v43 }
 0x182   : > { %v725_v40 = vpack.c.bf16 %v649_v36, %v649_v36  ;;  %v726_v41 = vpack.c.bf16 %v650_v37, %v650_v37 }
 0x183   : > { %v727_v48 = vpack.c.bf16 %v651_v46, %v651_v46  ;;  %v728_v49 = vpack.c.bf16 %v652_v47, %v652_v47 }
 0x184   : > { %1520 = vmatmul.mubr.msk.bf16.vlgmr.msra.gmra.mrb[0].mxu1 %vm734_vm2, %v725_v40  ;;  %1526 = vmatmul.mubr.msk.bf16.vlgmr.msra.gmra.mrb[4].mxu0 %vm734_vm2, %v726_v41 }
 0x185   : > { %1530 = vmatpush3.bf16.xpose.msra.mxu1 %v831_v44  ;;  %1536 = vmatpush3.bf16.xpose.msra.mxu0 %v877_v45 }
 0x186   : > { %1531 = vmatprep.mubr.msk.bf16.mxu1 %vm1715_vm0, %v1714_v1  ;;  %1537 = vmatprep.mubr.msk.bf16.mxu0 %vm1715_vm0, %v1714_v1 }
 0x187   : > { %1541 = vmatprep.subr.bf16.mxu1 %v1714_v1  ;;  %1547 = vmatprep.subr.bf16.mxu0 %v1714_v1 }
 0x18c   : > { %1532 = vmatmul.mubr.msk.bf16.vlgmr.msra.gmra.mrb[4].mxu1 %vm734_vm2, %v727_v48  ;;  %1538 = vmatmul.mubr.msk.bf16.vlgmr.msra.gmra.mrb[8].mxu0 %vm734_vm2, %v728_v49 }
 0x18d   : > { %1543 = vmatprep.mubr.msk.bf16.mxu1 %vm1715_vm0, %v1714_v1  ;;  %1549 = vmatprep.mubr.msk.bf16.mxu0 %vm1715_vm0, %v1714_v1 }
 0x257   : > { %v775_v51 = vpop.f32.mrb[0].mxu1  ;;  %v821_v52 = vpop.f32.mrb[4].mxu0 }
 0x258   : > { %v776_v53 = vadd.f32 %v775_v51, %v733_v50  ;;  %v822_v54 = vadd.f32 %v821_v52, %v733_v50  ;;  %v1521_v55 = vpop.f32.mrb[1].mxu1  ;;  %v1527_v56 = vpop.f32.mrb[5].mxu0 }
 0x259   : > { %v778_v57 = vpop.f32.mrb[2].mxu1  ;;  %v824_v58 = vpop.f32.mrb[6].mxu0 }
 0x25a   : > { %v1522_v59 = vpop.f32.mrb[3].mxu1  ;;  %v1528_v60 = vpop.f32.mrb[7].mxu0  ;;  %v919_v61 = vsel %vm734_vm2, %v776_v53, -inf  ;;  %v922_v62 = vsel %vm734_vm2, %v822_v54, -inf }
 0x25b   : > { %920 = vmax.xlane.f32.xlu1 %v919_v61  ;;  %923 = vmax.xlane.f32.xlu0 %v922_v62 }
 0x25f   : > { %v867_v63 = vpop.f32.mrb[4].mxu1  ;;  %v913_v0 = vpop.f32.mrb[8].mxu0 }
 0x260   : > { %v868_v2 = vadd.f32 %v867_v63, %v733_v50  ;;  %v914_v3 = vadd.f32 %v913_v0, %v733_v50  ;;  %v1533_v4 = vpop.f32.mrb[5].mxu1  ;;  %v1539_v6 = vpop.f32.mrb[9].mxu0 }
 0x261   : > { %v870_v7 = vpop.f32.mrb[6].mxu1  ;;  %v916_v8 = vpop.f32.mrb[10].mxu0 }
 0x262   : > { %v1534_v9 = vpop.f32.mrb[7].mxu1  ;;  %v1540_v10 = vpop.f32.mrb[11].mxu0  ;;  %v925_v11 = vsel %vm734_vm2, %v868_v2, -inf  ;;  %v928_v12 = vsel %vm734_vm2, %v914_v3, -inf }
 0x263   : > { %926 = vmax.xlane.f32.xlu0 %v925_v11  ;;  %929 = vmax.xlane.f32.xlu1 %v928_v12 }
 0x274   : > { %308 = vrot.lane.b32.xlu1 %v1833_v5, %s1725_s7  ;;  %s215_s7 = scalar_lea.vmem [#allocation2], %s1454_s25 }
 0x279   : > { %305 = vrot.lane.b32.xlu0 %v1833_v5, %s1726_s8  ;;  %s1391_s8 = sshll.u32 %s215_s7, 4  ;;  %s1999_s8 = int_to_ptr.vmem [resolvable:$true] %s1391_s8 }
 0x27a   : > { %s1650_s12 = scalar_lea.vmem %s1999_s8, 128  ;;  %p1657_p0 = scmp.lt.s32.totalorder %s1999_s8, %s1655_s14 }
 0x27b   : > { %p1651_p11 = scmp.ne.s32.totalorder %s1999_s8, %s1650_s12 }
 0x27d   : > { %p1652_p12 = pnand %p1651_p11, %p1801_p5 }
 0x27f   : > { %p1653_p13 = pneg %p1652_p12 }
 0x2e8   : > { %v921_v13 = vpop.xlane.xlu1 %920  ;;  %v924_v14 = vpop.xlane.xlu0 %923 }
 0x2e9   : > { %v931_v15 = vsub.f32 %v776_v53, %v921_v13  ;;  %v932_v16 = vsub.f32 %v822_v54, %v924_v14 }
 0x2eb   : > { %v935_v17 = vmul.f32 1.442695, %v931_v15  ;;  %v937_v18 = vmul.f32 1.442695, %v932_v16 }
 0x2ed   : > { %1634 = vpow2.f32 %v935_v17 }
 0x2ee   : > { %1636 = vpow2.f32 %v937_v18 }
 0x2f0   : > { %v930_v24 = vpop.xlane.xlu1 %929  ;;  %v927_v25 = vpop.xlane.xlu0 %926 }
 0x2f1   : > { %v934_v27 = vsub.f32 %v914_v3, %v930_v24  ;;  %v933_v28 = vsub.f32 %v868_v2, %v927_v25 }
 0x2f3   : > { %v941_v29 = vmul.f32 1.442695, %v934_v27  ;;  %v939_v30 = vmul.f32 1.442695, %v933_v28 }
 0x2f4   : > { %v309_v35 = vpop.permute.xlu1 %308 }
 0x2f5   : > { %1638 = vpow2.f32 %v941_v29 }
 0x2f6   : > { %1640 = vpow2.f32 %v939_v30 }
 0x2f7   : > { %v1909_v20 = vpop.eup %1634 }
 0x2f8   : > { %v1911_v21 = vpop.eup %1636  ;;  %v943_v22 = vsel %vm734_vm2, %v1909_v20, 0.0 }
 0x2f9   : > { %944 = vadd.xlane.f32.xlu0 %v943_v22  ;;  %v946_v23 = vsel %vm734_vm2, %v1911_v21, 0.0 }
 0x2fa   : > { %947 = vadd.xlane.f32.xlu1 %v946_v23 }
 0x2ff   : > { %v1919_v31 = vpop.eup %1638 }
 0x300   : > { %v1921_v32 = vpop.eup %1640  ;;  %v952_v33 = vsel %vm734_vm2, %v1919_v31, 0.0 }
 0x301   : > { %v949_v34 = vsel %vm734_vm2, %v1921_v32, 0.0 }
 0x30b   : > { %311 = vrot.lane.b32.xlu1 %v1833_v5, %s1727_s9 }
 0x30f   : > { %314 = vrot.lane.b32.xlu0 %v1833_v5, %s1728_s10  ;;  %v306_v5 = vpop.permute.xlu0 %305 }
 0x32e   : > { %953 = vadd.xlane.f32.xlu0 %v952_v33 }
 0x32f   : > { %950 = vadd.xlane.f32.xlu1 %v949_v34 }
 0x386   : > { %v945_v36 = vpop.xlane.xlu0 %944 }
 0x387   : > { %v948_v37 = vpop.xlane.xlu1 %947  ;;  %1642 = vrcp.f32 %v945_v36 }
 0x388   : > { %1644 = vrcp.f32 %v948_v37 }
 0x38a   : > { %v315_v38 = vpop.permute.xlu0 %314 }
 0x38b   : > { %v469_v39 = vcombine.low %v309_v35, %v315_v38  ;;  %v470_v40 = vcombine.high %v309_v35, %v315_v38  ;;  %v312_v41 = vpop.permute.xlu1 %311 }
 0x38c   : > { %v453_v42 = vcombine.low %v306_v5, %v312_v41  ;;  %v454_v43 = vcombine.high %v306_v5, %v312_v41 }
 0x38d   : > { %v477_v44 = vrot.slane %v469_v39, %v1842_v19  ;;  %v484_v45 = vrot.slane %v470_v40, %v1842_v19 }
 0x38e   : > { %v461_v46 = vrot.slane %v453_v42, %v1842_v19  ;;  %v468_v47 = vrot.slane %v454_v43, %v1842_v19 }
 0x390   : > { %v485_v48 = vcombine.low %v461_v46, %v477_v44  ;;  %v486_v49 = vcombine.high %v461_v46, %v477_v44  ;;  %v501_v50 = vcombine.low %v468_v47, %v484_v45  ;;  %v502_v51 = vcombine.high %v468_v47, %v484_v45 }
 0x391   : > { %v1643_v8 = vpop.eup %1642 }
 0x392   : > { %v493_v52 = vrot.slane %v485_v48, %v1844_v26  ;;  %v500_v53 = vrot.slane %v486_v49, %v1844_v26  ;;  %v509_v54 = vrot.slane %v501_v50, %v1844_v26  ;;  %v516_v55 = vrot.slane %v502_v51, %v1844_v26  ;;  %v1645_v11 = vpop.eup %1644 }
 0x393   : > { %v959_v16 = vmul.f32 %v1643_v8, %v1909_v20  ;;  %v960_v17 = vmul.f32 %v1645_v11, %v1911_v21 }
 0x394   : > { %v657_v56 = vcombine.low %v493_v52, %v500_v53  ;;  %v1467_v57 = vcombine.high %v493_v52, %v500_v53  ;;  %v673_v58 = vcombine.low %v509_v54, %v516_v55  ;;  %v1468_v59 = vcombine.high %v509_v54, %v516_v55 }
 0x395   : > { %v963_v28 = vpack.c.bf16 %v959_v16, %v959_v16  ;;  %v964_v29 = vpack.c.bf16 %v960_v17, %v960_v17 }
 0x396   : > { %v664_v60 = vrot.slane %v657_v56, %v1842_v19  ;;  %v672_v61 = vrot.slane %v1467_v57, %v1842_v19  ;;  %v680_v62 = vrot.slane %v673_v58, %v1842_v19  ;;  %v688_v63 = vrot.slane %v1468_v59, %v1842_v19 }
 0x398   : > { %v689_v0 = vcombine.low %v664_v60, %v672_v61  ;;  %v690_v2 = vcombine.high %v664_v60, %v672_v61  ;;  %v705_v3 = vcombine.low %v680_v62, %v688_v63  ;;  %v706_v4 = vcombine.high %v680_v62, %v688_v63 }
 0x39a   : > { %v697_v6 = vrot.slane %v689_v0, %v1844_v26  ;;  %v704_v7 = vrot.slane %v690_v2, %v1844_v26  ;;  %v713_v9 = vrot.slane %v705_v3, %v1844_v26  ;;  %v720_v10 = vrot.slane %v706_v4, %v1844_v26  ;;  %v1632_v2 = vld [vmem:[%s2043_s3] sm:$0xff]  }
 0x39c   : > { %v721_v12 = vcombine.low %v697_v6, %v713_v9  ;;  %v722_v13 = vcombine.high %v697_v6, %v713_v9  ;;  %v723_v14 = vcombine.low %v704_v7, %v720_v10  ;;  %v724_v15 = vcombine.high %v704_v7, %v720_v10 }
 0x39e   : > { %v967_v18 = vpack.c.bf16 %v721_v12, %v721_v12  ;;  %v968_v22 = vpack.c.bf16 %v722_v13, %v722_v13  ;;  %v969_v25 = vpack.c.bf16 %v723_v14, %v723_v14  ;;  %v970_v27 = vpack.c.bf16 %v724_v15, %v724_v15  ;;  %v1633_v12 = vld [vmem:[%s2043_s3 + $0x8] sm:$0xff]  }
 0x3a0   : > { %v976_v23 = vsel %vm974_vm3, %v967_v18, 0  ;;  %v1022_v24 = vsel %vm974_vm3, %v968_v22, 0  ;;  %v1068_v20 = vsel %vm974_vm3, %v969_v25, 0  ;;  %v1114_v21 = vsel %vm974_vm3, %v970_v27, 0 }
 0x3a1   : > { %1542 = vmatpush3.bf16.msra.mxu1 %v976_v23  ;;  %1548 = vmatpush3.bf16.msra.mxu0 %v1022_v24 }
 0x3a2   : > { %1553 = vmatprep.subr.bf16.mxu1 %v1714_v1  ;;  %1559 = vmatprep.subr.bf16.mxu0 %v1714_v1 }
 0x3a4   : > { %1544 = vmatmul.mubr.msk.bf16.vlgmr.msra.gmra.mrb[8].mxu1 %vm734_vm2, %v963_v28  ;;  %1550 = vmatmul.mubr.msk.bf16.vlgmr.msra.gmra.mrb[12].mxu0 %vm734_vm2, %v964_v29 }
 0x3a5   : > { %1554 = vmatpush3.bf16.msra.mxu1 %v1068_v20  ;;  %1560 = vmatpush3.bf16.msra.mxu0 %v1114_v21 }
 0x3a6   : > { %1555 = vmatprep.mubr.msk.bf16.mxu1 %vm1715_vm0, %v1714_v1  ;;  %1561 = vmatprep.mubr.msk.bf16.mxu0 %vm1715_vm0, %v1714_v1 }
 0x3a7   : > { %1565 = vmatprep.subr.bf16.mxu1 %v1714_v1 }
 0x3bb   : > { %v954_v30 = vpop.xlane.xlu0 %953 }
 0x3bc   : > { %1646 = vrcp.f32 %v954_v30  ;;  %v951_v33 = vpop.xlane.xlu1 %950 }
 0x3bd   : > { %1648 = vrcp.f32 %v951_v33 }
 0x3c6   : > { %v1647_v34 = vpop.eup %1646 }
 0x3c7   : > { %v1649_v5 = vpop.eup %1648  ;;  %v962_v35 = vmul.f32 %v1647_v34, %v1919_v31 }
 0x3c8   : > { %v961_v36 = vmul.f32 %v1649_v5, %v1921_v32 }
 0x3c9   : > { %v966_v37 = vpack.c.bf16 %v962_v35, %v962_v35 }
 0x3ca   : > { %v965_v38 = vpack.c.bf16 %v961_v36, %v961_v36  ;;  %v1479_v36 = vld [vmem:[%s2044_s4] ss:$0 sm:$0xff] }
 0x3cb   : > { %1562 = vmatmul.mubr.msk.bf16.vlgmr.msra.gmra.mrb[16].mxu0 %vm734_vm2, %v966_v37 }
 0x3cc   : > { %1556 = vmatmul.mubr.msk.bf16.vlgmr.msra.gmra.mrb[12].mxu1 %vm734_vm2, %v965_v38 }
 0x3cd   : > { %1569 = vmatprep.mubr.msk.bf16.mxu1 %vm1715_vm0, %v1714_v1  ;;  %1566 = vmatpush3.bf16.msra.mxu1 %v1632_v2 }
 0x3ce   : > { %1567 = vmatprep.subr.bf16.mxu1 %v1714_v1 }
 0x3d1   : > { %1568 = vmatpush3.bf16.msra.mxu1 %v1633_v12 }
 0x477   : > { %v1012_v39 = vpop.f32.mrb[8].mxu1  ;;  %v1058_v40 = vpop.f32.mrb[12].mxu0 }
 0x478   : > { %v1545_v41 = vpop.f32.mrb[9].mxu1  ;;  %v1551_v42 = vpop.f32.mrb[13].mxu0 }
 0x479   : > { %v1015_v43 = vpop.f32.mrb[10].mxu1  ;;  %v1061_v44 = vpop.f32.mrb[14].mxu0 }
 0x47a   : > { %v1546_v45 = vpop.f32.mrb[11].mxu1  ;;  %v1552_v46 = vpop.f32.mrb[15].mxu0 }
 0x49e   : > { %v1150_v31 = vpop.f32.mrb[16].mxu0 }
 0x49f   : > { %v1104_v47 = vpop.f32.mrb[12].mxu1  ;;  %v1172_v32 = vcombine.low %v1058_v40, %v1150_v31  ;;  %v1173_v48 = vcombine.high %v1058_v40, %v1150_v31  ;;  %v1563_v49 = vpop.f32.mrb[17].mxu0 }
 0x4a0   : > { %v1156_v50 = vcombine.low %v1012_v39, %v1104_v47  ;;  %v1157_v51 = vcombine.high %v1012_v39, %v1104_v47  ;;  %v1557_v52 = vpop.f32.mrb[13].mxu1  ;;  %v1153_v53 = vpop.f32.mrb[18].mxu0 }
 0x4a1   : > { %v1180_v54 = vrot.slane %v1172_v32, %v1842_v19  ;;  %v1187_v55 = vrot.slane %v1173_v48, %v1842_v19  ;;  %v1107_v56 = vpop.f32.mrb[14].mxu1  ;;  %v1564_v57 = vpop.f32.mrb[19].mxu0 }
 0x4a2   : > { %v1164_v58 = vrot.slane %v1156_v50, %v1842_v19  ;;  %v1171_v59 = vrot.slane %v1157_v51, %v1842_v19  ;;  %v1558_v60 = vpop.f32.mrb[15].mxu1 }
 0x4a4   : > { %v1188_v61 = vcombine.low %v1164_v58, %v1180_v54  ;;  %v1189_v62 = vcombine.high %v1164_v58, %v1180_v54  ;;  %v1204_v63 = vcombine.low %v1171_v59, %v1187_v55  ;;  %v1205_v0 = vcombine.high %v1171_v59, %v1187_v55 }
 0x4a6   : > { %v1196_v3 = vrot.slane %v1188_v61, %v1844_v26  ;;  %v1203_v4 = vrot.slane %v1189_v62, %v1844_v26  ;;  %v1212_v6 = vrot.slane %v1204_v63, %v1844_v26  ;;  %v1219_v7 = vrot.slane %v1205_v0, %v1844_v26 }
 0x4a8   : > { %v1224_v8 = vcombine.low %v1196_v3, %v1203_v4  ;;  %v1477_v9 = vcombine.high %v1196_v3, %v1203_v4  ;;  %v1240_v10 = vcombine.low %v1212_v6, %v1219_v7  ;;  %v1478_v11 = vcombine.high %v1212_v6, %v1219_v7 }
 0x4aa   : > { %v1231_v13 = vrot.slane %v1224_v8, %v1842_v19  ;;  %v1239_v14 = vrot.slane %v1477_v9, %v1842_v19  ;;  %v1247_v15 = vrot.slane %v1240_v10, %v1842_v19  ;;  %v1255_v16 = vrot.slane %v1478_v11, %v1842_v19 }
 0x4ac   : > { %v1257_v17 = vcombine.high %v1231_v13, %v1239_v14  ;;  %v1273_v18 = vcombine.high %v1247_v15, %v1255_v16  ;;  %v1256_v1 = vcombine.low %v1231_v13, %v1239_v14  ;;  %v1272_v22 = vcombine.low %v1247_v15, %v1255_v16 }
 0x4ae   : > { %v1271_v23 = vrot.slane %v1257_v17, %v1844_v26  ;;  %v1287_v24 = vrot.slane %v1273_v18, %v1844_v26  ;;  %v1264_v25 = vrot.slane %v1256_v1, %v1844_v26  ;;  %v1280_v27 = vrot.slane %v1272_v22, %v1844_v26 }
 0x4b0   : > { %v1290_v28 = vcombine.low %v1271_v23, %v1287_v24  ;;  %v1289_v29 = vcombine.high %v1264_v25, %v1280_v27  ;;  %v1291_v20 = vcombine.high %v1271_v23, %v1287_v24  ;;  %v1288_v21 = vcombine.low %v1264_v25, %v1280_v27 }
 0x4b2   : > { %1297 = vrot.lane.b32.xlu1 %v1290_v28, %s1729_s15  ;;  %1293 = vrot.lane.b32.xlu0 %v1289_v29, %s1730_s16  ;;  %s1656_s15 = scalar_lea.vmem %s1655_s14, 256 }
 0x4b3   : > { %p1658_p1 = scmp.lt.s32.totalorder %s1656_s15, %s1650_s12 }
 0x4b5   : > { %p1659_p2 = por %p1658_p1, %p1657_p0 }
 0x4b6   : > { %1301 = vrot.lane.b32.xlu1 %v1291_v20, %s1731_s17 }
 0x4b7   : > { %p1660_p3 = pnand %p1659_p2, %p1653_p13 }
 0x524   : > { %v1298_v19 = vpop.permute.xlu1 %1297  ;;  %v1294_v30 = vpop.permute.xlu0 %1293 }
 0x525   : > { %v1304_v33 = vsel %vm734_vm2, %v1288_v21, %v1294_v30 }
 0x526   : > { %v1306_v26 = vsel %vm1305_vm4, %v1304_v33, %v1298_v19 }
 0x528   : > { %v1302_v34 = vpop.permute.xlu1 %1301 }
 0x529   : > { %v1308_v5 = vsel %vm1307_vm5, %v1306_v26, %v1302_v34 }
 0x52a   : > { %v1309_v35 = vpack.c.bf16 %v1308_v5, %v1308_v5 }
 0x52c   : > { %1570 = vmatmul.mubr.msk.bf16.vlgmr.msra.gmra.mrb[16].mxu1 %vm239_vm1, %v1309_v35 }
 0x5ff   : > { %v1370_v37 = vpop.f32.mrb[16].mxu1 }
 0x600   : > { %v1371_v38 = vadd.f32 %v1479_v36, %v1370_v37  ;;  %v1571_v39 = vpop.f32.mrb[17].mxu1 }
 0x601   : > { %v1373_v40 = vpop.f32.mrb[18].mxu1 }
 0x602   : > { %v1572_v41 = vpop.f32.mrb[19].mxu1  ;;  %1376 = vst.msk [vmem:[%s215_s7] sm:$0xff] %vm239_vm1, %v1371_v38 }
 0x603   : > { %1663 = shalt.err (!%p1660_p3)
}
 0x604   : > { %s1664_s16 = scalar_lea.hbm %s1997_s11, 128  ;;  %s1668_s25 = scalar_lea.hbm %s2045_s5, 256 }
 0x605   : > { %p1665_p4 = scmp.ne.s32.totalorder %s1997_s11, %s1664_s16  ;;  %p1669_p9 = scmp.lt.u32.totalorder %s1997_s11, %s2045_s5 }
 0x606   : > { %p1670_p10 = scmp.lt.u32.totalorder %s1668_s25, %s1664_s16  ;;  %p1672_p12 = scmp.lt.u32.totalorder %s1664_s16, %s1997_s11 }
 0x607   : > { %p1666_p7 = pnand %p1665_p4, %p1801_p5 }
 0x608   : > { %p1671_p11 = por %p1670_p10, %p1669_p9 }
 0x609   : > { %p1667_p8 = pneg %p1666_p7 }
 0x60a   : > { %p1673_p13 = por %p1672_p12, %p1671_p11 }
 0x60c   : > { %p1674_p0 = pnand %p1673_p13, %p1667_p8 }
 0x60e   : > { %1677 = shalt.err (!%p1674_p0)
}
 0x60f   : > { %1573 = dma.vmem_to_hbm [thread:$0]  (%p1801_p5), %s1999_s8, 128, %s1997_s11, %s1378_s22  }
 0x610 PF: > { %p1579_p1 = scmp.ge.s32.totalorder %s1712_s21, 2  ;;  %s1403_s6 = sand.u32 1, %s1700_s18  }
 0x611   : > { %s1404_s7 = scalar_lea.sflag [#allocation3], %s1403_s6 }
 0x612   : > { %p1576_p2 = pnand %p1579_p1, %p1805_p6 }
 0x614   : > { %1695 = dma.done.wait (!%p1576_p2), %s1404_s7, 128  }
 0x615   : > { %1697 = vsyncadd (!%p1576_p2), %s1404_s7, 4294967168  ;;  %p15_p3 = scmp.ge.s32.totalorder %s1788_s24, 4   ;;  %s2048_s18 = smov %s1704_s19 }
 0x616   : > { %s2049_s19 = smov %s1708_s20  ;;  %s2050_s20 = smov %s1799_s27 }
 0x617   : > { %s2051_s21 = smov %s1788_s24  ;;  %17 = sbr.rel (!%p15_p3) target bundleno = 3 (0x3), region = 75 }
 0x61e   :  { %1409 = vsyncpa [#allocation3], 1 }
 0x61f   :  { %1411 = vsyncpa [#allocation3 + $0x1], 1 }

</bundles_post_ra>
